<compile_context>
chip_gen: v6e
topology: v6e:2x2x1
jax: 0.10.0
libtpu: 0.0.40
codegen_flags: <defaults>
</compile_context>

<pallas_src>
import functools
import math

import jax
import jax.numpy as jnp
from jax.experimental import pallas as pl
from jax.experimental.pallas import tpu as pltpu

LN_EPS = 1e-12  # BERT default layer_norm_eps
_INV_SQRT2 = 1.0 / math.sqrt(2.0)


def _round_up(x, m):
    return (x + m - 1) // m * m


def _sublane_multiple(dtype):
    # second-to-last BlockSpec dim must be a multiple of 8 (32-bit), 16 (16-bit),
    # 32 (8-bit) unless it equals the full array dim.
    return max(8, 32 // jnp.dtype(dtype).itemsize)


def _vmem_cap_bytes():
    """Physical VMEM minus headroom (gen-aware: 64 MiB on v7x, 128 MiB v5e/v6e)."""
    try:
        phys = int(pltpu.get_tpu_info().vmem_capacity_bytes)
    except Exception:
        phys = 64 << 20  # conservative fallback (v7x-sized)
    return max(32 << 20, phys - (16 << 20))


def _lm_head_kernel(x_ref,
                    wt_ref, bt_ref,        # transform dense  (H,H), (1,H)
                    gamma_ref, beta_ref,   # layernorm        (1,H), (1,H)
                    w1_ref, b1_ref,        # down_proj[0]     (H,4E), (1,4E)
                    w2_ref, b2_ref,        # down_proj[2]     (4E,E), (1,E)
                    wd_ref, bd_ref,        # decoder          (E,v_tile), (1,v_tile)
                    o_ref,                 # out              (row_tile, v_tile)
                    h_ref):                # VMEM scratch     (row_tile, E) w_dtype
    w_dtype = wt_ref.dtype  # f32 or bf16 (MXU operand dtype)

    # Everything up to the decoder depends only on the row tile: run it once
    # per row tile (the vocab axis is the inner, sequential grid axis) and
    # cache the result in VMEM scratch (already in the matmul operand dtype).
    @pl.when(pl.program_id(1) == 0)
    def _():
        x = x_ref[...].astype(w_dtype)
        # transform: dense -> exact erf-GELU -> LayerNorm (stats kept in f32)
        h = jnp.dot(x, wt_ref[...], preferred_element_type=jnp.float32)
        h = h + bt_ref[...]
        h = 0.5 * h * (1.0 + jax.lax.erf(h * _INV_SQRT2))
        # one-pass LN statistics: var = E[h^2] - mean^2 (clamped for safety)
        mean = jnp.mean(h, axis=-1, keepdims=True)
        msq = jnp.mean(h * h, axis=-1, keepdims=True)
        var = jnp.maximum(msq - mean * mean, 0.0)
        h = (h - mean) * jax.lax.rsqrt(var + LN_EPS)
        h = h * gamma_ref[...] + beta_ref[...]
        # down_proj: Linear -> Tanh -> Linear
        h = jnp.dot(h.astype(w_dtype), w1_ref[...],
                    preferred_element_type=jnp.float32) + b1_ref[...]
        h = jnp.tanh(h)
        h = jnp.dot(h.astype(w_dtype), w2_ref[...],
                    preferred_element_type=jnp.float32) + b2_ref[...]
        h_ref[...] = h.astype(h_ref.dtype)

    # decoder: stream one (E, v_tile) slab of the decoder weight per grid step.
    out = jnp.dot(h_ref[...], wd_ref[...],
                  preferred_element_type=jnp.float32) + bd_ref[...]
    o_ref[...] = out.astype(o_ref.dtype)


def prepare_params(params, weight_dtype=jnp.float32, vocab_pad_to=512):
    """One-time weight prep (do NOT call per forward step).

    * Transposes Linear weights to (in, out) and reshapes 1-D params to (1, N).
    * Optionally casts matmul weights to bf16 (recommended on v5e/v6e/v7x —
      the kernel is weight-bandwidth bound); biases / LN params stay f32 and
      accumulation is always f32.
    * Pads the decoder weight/bias ONCE to a lane-dense vocab multiple
      (default 512) so the forward never re-pads the full E x V weight.
    """
    f32 = jnp.float32
    wd = jnp.asarray(params["decoder_w"]).T.astype(weight_dtype)   # (E, V)
    bd = jnp.asarray(params["decoder_b"])[None, :].astype(f32)     # (1, V)
    V = wd.shape[1]
    V_pad = _round_up(V, vocab_pad_to)
    if V_pad != V:
        wd = jnp.pad(wd, ((0, 0), (0, V_pad - V)))
        bd = jnp.pad(bd, ((0, 0), (0, V_pad - V)))
    return {
        "wt": jnp.asarray(params["transform_dense_w"]).T.astype(weight_dtype),
        "bt": jnp.asarray(params["transform_dense_b"])[None, :].astype(f32),
        "gamma": jnp.asarray(params["ln_gamma"])[None, :].astype(f32),
        "beta": jnp.asarray(params["ln_beta"])[None, :].astype(f32),
        "w1": jnp.asarray(params["down1_w"]).T.astype(weight_dtype),
        "b1": jnp.asarray(params["down1_b"])[None, :].astype(f32),
        "w2": jnp.asarray(params["down2_w"]).T.astype(weight_dtype),
        "b2": jnp.asarray(params["down2_b"])[None, :].astype(f32),
        "wd": wd,
        "bd": bd,
        "vocab_size": int(V),   # static python int, extracted before jit
    }


@functools.partial(
    jax.jit,
    static_argnames=("V", "row_tile", "v_tile", "out_dtype", "wd_buffers",
                     "vmem_cap"))
def _lm_head_forward(hidden_states, wt, bt, gamma, beta, w1, b1, w2, b2, wd, bd,
                     *, V, row_tile, v_tile, out_dtype, wd_buffers, vmem_cap):
    out_dtype = jnp.dtype(out_dtype)
    B, S, H = hidden_states.shape
    M = B * S
    E4, E = w1.shape[1], w2.shape[1]
    V_pad = wd.shape[1]                       # already lane-padded at prep time
    w_bytes = jnp.dtype(wt.dtype).itemsize
    x_bytes = jnp.dtype(hidden_states.dtype).itemsize
    o_bytes = out_dtype.itemsize

    # sublane multiple covering input, output and weight/scratch dtypes.
    sub = max(_sublane_multiple(hidden_states.dtype),
              _sublane_multiple(out_dtype),
              _sublane_multiple(wt.dtype))

    # ---- row tile: the dominant HBM lever (decoder-weight traffic scales as
    #      M/row_tile) -> keep it as large as possible, but clamp to the row
    #      count and cap so >= 2 row tiles exist when possible (megacore). ----
    row_tile = max(sub, (row_tile // sub) * sub)
    row_tile = min(row_tile, _round_up(M, sub))
    if M >= 2 * sub:
        row_tile = min(row_tile, _round_up((M + 1) // 2, sub))

    # ---- vocab tile: lane-dense multiple of 128 that divides V_pad (no
    #      per-call re-padding of the decoder weight). ----
    v_tile = max(128, (v_tile // 128) * 128)
    v_tile = min(v_tile, V_pad)
    while V_pad % v_tile != 0:
        v_tile -= 128

    # ---- VMEM budget (includes j==0 transform temporaries) and auto-shrink:
    #      shrink v_tile first (VMEM-only cost), then row_tile. ----
    def vmem_budget(rt, vt):
        resident = ((H * H + H * E4 + E4 * E) * w_bytes
                    + (3 * H + E4 + E) * 4)                 # single-buffered
        streamed = (2 * rt * H * x_bytes                    # x tiles (2x)
                    + wd_buffers * E * vt * w_bytes         # decoder slabs
                    + 2 * vt * 4                            # decoder bias tiles
                    + 2 * rt * vt * o_bytes)                # output tiles (2x)
        scratch = rt * E * w_bytes                          # cached activation
        transform_tmp = 2 * rt * max(H, E4) * 4             # j==0 f32 temps
        return int(1.25 * (resident + streamed + scratch + transform_tmp)) \
            + (8 << 20)

    while vmem_budget(row_tile, v_tile) > vmem_cap:
        if v_tile > 512:
            v_tile //= 2            # halving preserves 128-alignment & divisibility
        elif row_tile > sub:
            row_tile = max(sub, ((row_tile // 2) // sub) * sub)
        else:
            break

    M_pad = _round_up(M, row_tile)
    x2d = hidden_states.reshape(M, H)
    if M_pad != M:  # cheap row padding only
        x2d = jnp.pad(x2d, ((0, M_pad - M), (0, 0)))

    n_row_tiles = M_pad // row_tile
    grid = (n_row_tiles, V_pad // v_tile)

    # Grid-invariant parameters: constant index_map -> never re-fetched, so a
    # single VMEM buffer suffices (halves their footprint vs default 2x).
    def resident(shape):
        return pl.BlockSpec(shape, lambda i, j: (0,) * len(shape),
                            pipeline_mode=pl.Buffered(1))

    vmem_limit = int(min(max(vmem_budget(row_tile, v_tile), 32 << 20), vmem_cap))

    cost = pl.CostEstimate(
        flops=int(2 * M_pad * (H * H + H * E4 + E4 * E + E * V_pad)),
        transcendentals=int(M_pad * (H + E4)),
        bytes_accessed=int(M_pad * H * x_bytes + M_pad * V_pad * o_bytes
                           + (H * H + H * E4 + E4 * E) * w_bytes
                           + n_row_tiles * (E * V_pad * w_bytes + V_pad * 4)
                           + (3 * H + E4 + E) * 4),
    )

    out2d = pl.pallas_call(
        _lm_head_kernel,
        out_shape=jax.ShapeDtypeStruct((M_pad, V_pad), out_dtype),
        grid_spec=pltpu.PrefetchScalarGridSpec(
            num_scalar_prefetch=0,
            grid=grid,
            in_specs=[
                pl.BlockSpec((row_tile, H), lambda i, j: (i, 0)),   # x rows
                resident((H, H)), resident((1, H)),                 # wt, bt
                resident((1, H)), resident((1, H)),                 # gamma, beta
                resident((H, E4)), resident((1, E4)),               # w1, b1
                resident((E4, E)), resident((1, E)),                # w2, b2
                pl.BlockSpec((E, v_tile), lambda i, j: (0, j),      # wd slab
                             pipeline_mode=pl.Buffered(wd_buffers)),
                pl.BlockSpec((1, v_tile), lambda i, j: (0, j)),     # bd tile
            ],
            out_specs=pl.BlockSpec((row_tile, v_tile), lambda i, j: (i, j)),
            # scratch in the weight dtype: no per-vocab-step cast, half the
            # scratch VMEM when weights are bf16.
            scratch_shapes=[pltpu.VMEM((row_tile, E), wt.dtype)],
        ),
        compiler_params=pltpu.CompilerParams(
            dimension_semantics=("parallel", "arbitrary"),
            vmem_limit_bytes=vmem_limit),
        cost_estimate=cost,
    )(x2d, wt, bt, gamma, beta, w1, b1, w2, b2, wd, bd)

    return out2d[:M, :V].reshape(B, S, V)


def bert_lm_prediction_head(hidden_states, prepped, *, row_tile=512,
                            v_tile=1024, out_dtype=None, wd_buffers=2):
    """hidden_states: [B, S, H].  prepped: output of prepare_params().
    Returns [B, S, V] in `out_dtype` (default: hidden_states.dtype).

    Tuning guidance:
      * row_tile is the big lever (decoder-weight re-streaming ~ M/row_tile):
        keep it 512-1024 on ALL generations.  Do NOT shrink row_tile to fit
        VMEM — shrink v_tile instead (v_tile only affects VMEM, not traffic).
      * v7x (64 MiB VMEM): row_tile>=512, v_tile~1024; the wrapper auto-shrinks
        v_tile (then row_tile) against a get_tpu_info-derived cap.
      * v5e/v6e (128 MiB VMEM): row_tile 512-1024, v_tile 1024-2048; if the wd
        DMA is exposed for small E, raise wd_buffers to 3.
      * bf16 weight storage (prepare_params(weight_dtype=jnp.bfloat16)) is
        recommended on v5e, v6e and v7x; accumulation and LN stats stay f32.
      * out_dtype=jnp.bfloat16 halves the M x V logits writeback.
    """
    V = int(prepped["vocab_size"])
    out_dt = jnp.dtype(hidden_states.dtype if out_dtype is None else out_dtype)
    return _lm_head_forward(
        hidden_states,
        prepped["wt"], prepped["bt"], prepped["gamma"], prepped["beta"],
        prepped["w1"], prepped["b1"], prepped["w2"], prepped["b2"],
        prepped["wd"], prepped["bd"],
        V=V, row_tile=int(row_tile), v_tile=int(v_tile),
        out_dtype=out_dt.name, wd_buffers=int(wd_buffers),
        vmem_cap=int(_vmem_cap_bytes()))


def init_params(key, hidden_size, input_emb_dim, vocab_size):
    ks = jax.random.split(key, 8)
    E4 = input_emb_dim * 4

    def lin(k, out_dim, in_dim):
        bound = 1.0 / math.sqrt(in_dim)
        return jax.random.uniform(k, (out_dim, in_dim), jnp.float32, -bound, bound)

    return {
        "transform_dense_w": lin(ks[0], hidden_size, hidden_size),
        "transform_dense_b": jax.random.uniform(ks[1], (hidden_size,), jnp.float32, -0.1, 0.1),
        "ln_gamma": jnp.ones((hidden_size,), jnp.float32),
        "ln_beta": jnp.zeros((hidden_size,), jnp.float32),
        "down1_w": lin(ks[2], E4, hidden_size),
        "down1_b": jax.random.uniform(ks[3], (E4,), jnp.float32, -0.1, 0.1),
        "down2_w": lin(ks[4], input_emb_dim, E4),
        "down2_b": jax.random.uniform(ks[5], (input_emb_dim,), jnp.float32, -0.1, 0.1),
        "decoder_w": lin(ks[6], vocab_size, input_emb_dim),
        # self.bias = nn.Parameter(torch.zeros(vocab_size)); decoder.bias = self.bias
        "decoder_b": jnp.zeros((vocab_size,), jnp.float32),
    }


def reference_forward(x, p):
    h = x @ p["transform_dense_w"].T + p["transform_dense_b"]
    h = 0.5 * h * (1.0 + jax.lax.erf(h / jnp.sqrt(2.0)))
    mean = jnp.mean(h, axis=-1, keepdims=True)
    var = jnp.mean(jnp.square(h - mean), axis=-1, keepdims=True)
    h = (h - mean) / jnp.sqrt(var + LN_EPS) * p["ln_gamma"] + p["ln_beta"]
    h = jnp.tanh(h @ p["down1_w"].T + p["down1_b"])
    h = h @ p["down2_w"].T + p["down2_b"]
    return h @ p["decoder_w"].T + p["decoder_b"]


if __name__ == "__main__":
    # Small config consistent with the module's forward:
    #   hidden_size=32, input_emb_dim=16, vocab_size=128, batch=2, seq=8
    B, S, H, E, V = 2, 8, 32, 16, 128

    key = jax.random.PRNGKey(0)
    k_x, k_p = jax.random.split(key)
    hidden_states = jax.random.normal(k_x, (B, S, H), jnp.float32)
    params = init_params(k_p, H, E, V)
    ref = reference_forward(hidden_states, params)

    # f32 weights / f32 logits: matches the f32 reference to tight tolerance.
    prepped = prepare_params(params)
    out = jax.block_until_ready(bert_lm_prediction_head(hidden_states, prepped))
    assert out.shape == (B, S, V)
    assert jnp.allclose(out, ref, atol=1e-4, rtol=1e-4), "f32 mismatch vs reference"

    # bf16 weight storage + bf16 logits (f32 accumulation + f32 LN stats) —
    # the recommended production mode; checked with a loose tolerance.
    prepped_bf16 = prepare_params(params, weight_dtype=jnp.bfloat16)
    out_bf16 = jax.block_until_ready(
        bert_lm_prediction_head(hidden_states, prepped_bf16,
                                out_dtype=jnp.bfloat16))
    assert out_bf16.shape == (B, S, V)
    out_bf16_f32 = out_bf16.astype(jnp.float32)
    assert bool(jnp.all(jnp.isfinite(out_bf16_f32)))
    assert float(jnp.max(jnp.abs(out_bf16_f32 - ref))) < 2e-1, "bf16 path diverged"

    print("KERNEL_OK")
</pallas_src>

<mosaic_0001>
module attributes {stable_mosaic.version = 11 : i64} {
  func.func @_lm_head_kernel(%arg0: i32, %arg1: i32, %arg2: memref<8x32xf32, #tpu.memory_space<vmem>>, %arg3: memref<32x32xf32, #tpu.memory_space<vmem>>, %arg4: memref<1x32xf32, #tpu.memory_space<vmem>>, %arg5: memref<1x32xf32, #tpu.memory_space<vmem>>, %arg6: memref<1x32xf32, #tpu.memory_space<vmem>>, %arg7: memref<32x64xf32, #tpu.memory_space<vmem>>, %arg8: memref<1x64xf32, #tpu.memory_space<vmem>>, %arg9: memref<64x16xf32, #tpu.memory_space<vmem>>, %arg10: memref<1x16xf32, #tpu.memory_space<vmem>>, %arg11: memref<16x512xf32, #tpu.memory_space<vmem>>, %arg12: memref<1x512xf32, #tpu.memory_space<vmem>>, %arg13: memref<8x512xf32, #tpu.memory_space<vmem>>, %arg14: memref<8x16xf32, #tpu.memory_space<vmem>>) attributes {dimension_semantics = [#tpu.dimension_semantics<parallel>, #tpu.dimension_semantics<arbitrary>], iteration_bounds = array<i64: 2, 1>, scalar_prefetch = 0 : i64, scratch_operands = 1 : i64, tpu.core_type = #tpu.core_type<tc>, window_params = [{transform_indices = @transform_0, window_bounds = array<i64: 8, 32>}, {pipeline_mode = #tpu.pipeline_mode<synchronous>, transform_indices = @transform_1, window_bounds = array<i64: 32, 32>}, {pipeline_mode = #tpu.pipeline_mode<synchronous>, transform_indices = @transform_2, window_bounds = array<i64: 1, 32>}, {pipeline_mode = #tpu.pipeline_mode<synchronous>, transform_indices = @transform_3, window_bounds = array<i64: 1, 32>}, {pipeline_mode = #tpu.pipeline_mode<synchronous>, transform_indices = @transform_4, window_bounds = array<i64: 1, 32>}, {pipeline_mode = #tpu.pipeline_mode<synchronous>, transform_indices = @transform_5, window_bounds = array<i64: 32, 64>}, {pipeline_mode = #tpu.pipeline_mode<synchronous>, transform_indices = @transform_6, window_bounds = array<i64: 1, 64>}, {pipeline_mode = #tpu.pipeline_mode<synchronous>, transform_indices = @transform_7, window_bounds = array<i64: 64, 16>}, {pipeline_mode = #tpu.pipeline_mode<synchronous>, transform_indices = @transform_8, window_bounds = array<i64: 1, 16>}, {pipeline_mode = #tpu.pipeline_mode<double_buffered>, transform_indices = @transform_9, window_bounds = array<i64: 16, 512>}, {transform_indices = @transform_10, window_bounds = array<i64: 1, 512>}, {transform_indices = @transform_11, window_bounds = array<i64: 8, 512>}]} {
    %c0_i32 = arith.constant 0 : i32
    %0 = arith.cmpi eq, %arg1, %c0_i32 : i32
    %1 = arith.extui %0 : i1 to i32
    %c0_i32_0 = arith.constant 0 : i32
    %2 = arith.cmpi ne, %1, %c0_i32_0 : i32
    scf.if %2 {
      %c0_8 = arith.constant 0 : index
      %c0_9 = arith.constant 0 : index
      %10 = vector.load %arg2[%c0_8, %c0_9] : memref<8x32xf32, #tpu.memory_space<vmem>>, vector<8x32xf32>
      %c0_10 = arith.constant 0 : index
      %c0_11 = arith.constant 0 : index
      %11 = vector.load %arg3[%c0_10, %c0_11] : memref<32x32xf32, #tpu.memory_space<vmem>>, vector<32x32xf32>
      %cst_12 = arith.constant dense<0.000000e+00> : vector<8x32xf32>
      %12 = tpu.matmul %10, %11, %cst_12 {dimension_numbers = #tpu.dot_dimension_numbers<[1], [0], [0], [1], [0, 0, 1, 1], [], []>} : vector<8x32xf32>, vector<32x32xf32>, vector<8x32xf32> -> vector<8x32xf32>
      %c0_13 = arith.constant 0 : index
      %c0_14 = arith.constant 0 : index
      %13 = vector.load %arg4[%c0_13, %c0_14] : memref<1x32xf32, #tpu.memory_space<vmem>>, vector<1x32xf32>
      %14 = vector.broadcast %13 : vector<1x32xf32> to vector<8x32xf32>
      %15 = arith.addf %12, %14 : vector<8x32xf32>
      %cst_15 = arith.constant 5.000000e-01 : f32
      %16 = vector.broadcast %cst_15 : f32 to vector<8x32xf32>
      %17 = arith.mulf %16, %15 : vector<8x32xf32>
      %cst_16 = arith.constant 0.707106769 : f32
      %18 = vector.broadcast %cst_16 : f32 to vector<8x32xf32>
      %19 = arith.mulf %15, %18 : vector<8x32xf32>
      %20 = math.erf %19 : vector<8x32xf32>
      %cst_17 = arith.constant 1.000000e+00 : f32
      %21 = vector.broadcast %cst_17 : f32 to vector<8x32xf32>
      %22 = arith.addf %21, %20 : vector<8x32xf32>
      %23 = arith.mulf %17, %22 : vector<8x32xf32>
      %cst_18 = arith.constant dense<0.000000e+00> : vector<8xf32>
      %24 = vector.multi_reduction <add>, %23, %cst_18 [1] : vector<8x32xf32> to vector<8xf32>
      %25 = vector.shape_cast %24 : vector<8xf32> to vector<8x1xf32>
      %cst_19 = arith.constant 3.200000e+01 : f32
      %26 = vector.broadcast %cst_19 : f32 to vector<8x1xf32>
      %27 = arith.divf %25, %26 : vector<8x1xf32>
      %28 = arith.mulf %23, %23 : vector<8x32xf32>
      %cst_20 = arith.constant dense<0.000000e+00> : vector<8xf32>
      %29 = vector.multi_reduction <add>, %28, %cst_20 [1] : vector<8x32xf32> to vector<8xf32>
      %30 = vector.shape_cast %29 : vector<8xf32> to vector<8x1xf32>
      %cst_21 = arith.constant 3.200000e+01 : f32
      %31 = vector.broadcast %cst_21 : f32 to vector<8x1xf32>
      %32 = arith.divf %30, %31 : vector<8x1xf32>
      %33 = arith.mulf %27, %27 : vector<8x1xf32>
      %34 = arith.subf %32, %33 : vector<8x1xf32>
      %cst_22 = arith.constant 0.000000e+00 : f32
      %35 = vector.broadcast %cst_22 : f32 to vector<8x1xf32>
      %36 = arith.maximumf %34, %35 : vector<8x1xf32>
      %37 = vector.broadcast %27 : vector<8x1xf32> to vector<8x32xf32>
      %38 = arith.subf %23, %37 : vector<8x32xf32>
      %cst_23 = arith.constant 9.99999996E-13 : f32
      %39 = vector.broadcast %cst_23 : f32 to vector<8x1xf32>
      %40 = arith.addf %36, %39 : vector<8x1xf32>
      %41 = math.rsqrt %40 : vector<8x1xf32>
      %42 = vector.broadcast %41 : vector<8x1xf32> to vector<8x32xf32>
      %43 = arith.mulf %38, %42 : vector<8x32xf32>
      %c0_24 = arith.constant 0 : index
      %c0_25 = arith.constant 0 : index
      %44 = vector.load %arg5[%c0_24, %c0_25] : memref<1x32xf32, #tpu.memory_space<vmem>>, vector<1x32xf32>
      %45 = vector.broadcast %44 : vector<1x32xf32> to vector<8x32xf32>
      %46 = arith.mulf %43, %45 : vector<8x32xf32>
      %c0_26 = arith.constant 0 : index
      %c0_27 = arith.constant 0 : index
      %47 = vector.load %arg6[%c0_26, %c0_27] : memref<1x32xf32, #tpu.memory_space<vmem>>, vector<1x32xf32>
      %48 = vector.broadcast %47 : vector<1x32xf32> to vector<8x32xf32>
      %49 = arith.addf %46, %48 : vector<8x32xf32>
      %c0_28 = arith.constant 0 : index
      %c0_29 = arith.constant 0 : index
      %50 = vector.load %arg7[%c0_28, %c0_29] : memref<32x64xf32, #tpu.memory_space<vmem>>, vector<32x64xf32>
      %cst_30 = arith.constant dense<0.000000e+00> : vector<8x64xf32>
      %51 = tpu.matmul %49, %50, %cst_30 {dimension_numbers = #tpu.dot_dimension_numbers<[1], [0], [0], [1], [0, 0, 1, 1], [], []>} : vector<8x32xf32>, vector<32x64xf32>, vector<8x64xf32> -> vector<8x64xf32>
      %c0_31 = arith.constant 0 : index
      %c0_32 = arith.constant 0 : index
      %52 = vector.load %arg8[%c0_31, %c0_32] : memref<1x64xf32, #tpu.memory_space<vmem>>, vector<1x64xf32>
      %53 = vector.broadcast %52 : vector<1x64xf32> to vector<8x64xf32>
      %54 = arith.addf %51, %53 : vector<8x64xf32>
      %55 = math.tanh %54 : vector<8x64xf32>
      %c0_33 = arith.constant 0 : index
      %c0_34 = arith.constant 0 : index
      %56 = vector.load %arg9[%c0_33, %c0_34] : memref<64x16xf32, #tpu.memory_space<vmem>>, vector<64x16xf32>
      %cst_35 = arith.constant dense<0.000000e+00> : vector<8x16xf32>
      %57 = tpu.matmul %55, %56, %cst_35 {dimension_numbers = #tpu.dot_dimension_numbers<[1], [0], [0], [1], [0, 0, 1, 1], [], []>} : vector<8x64xf32>, vector<64x16xf32>, vector<8x16xf32> -> vector<8x16xf32>
      %c0_36 = arith.constant 0 : index
      %c0_37 = arith.constant 0 : index
      %58 = vector.load %arg10[%c0_36, %c0_37] : memref<1x16xf32, #tpu.memory_space<vmem>>, vector<1x16xf32>
      %59 = vector.broadcast %58 : vector<1x16xf32> to vector<8x16xf32>
      %60 = arith.addf %57, %59 : vector<8x16xf32>
      %c0_38 = arith.constant 0 : index
      %c0_39 = arith.constant 0 : index
      %61 = vector.load %arg14[%c0_38, %c0_39] : memref<8x16xf32, #tpu.memory_space<vmem>>, vector<8x16xf32>
      tpu.vector_store %arg14[%c0_38, %c0_39], %60 {strides = array<i32>} : memref<8x16xf32, #tpu.memory_space<vmem>>, vector<8x16xf32>,
    } else {
    }
    %c0 = arith.constant 0 : index
    %c0_1 = arith.constant 0 : index
    %3 = vector.load %arg14[%c0, %c0_1] : memref<8x16xf32, #tpu.memory_space<vmem>>, vector<8x16xf32>
    %c0_2 = arith.constant 0 : index
    %c0_3 = arith.constant 0 : index
    %4 = vector.load %arg11[%c0_2, %c0_3] : memref<16x512xf32, #tpu.memory_space<vmem>>, vector<16x512xf32>
    %cst = arith.constant dense<0.000000e+00> : vector<8x512xf32>
    %5 = tpu.matmul %3, %4, %cst {dimension_numbers = #tpu.dot_dimension_numbers<[1], [0], [0], [1], [0, 0, 1, 1], [], []>} : vector<8x16xf32>, vector<16x512xf32>, vector<8x512xf32> -> vector<8x512xf32>
    %c0_4 = arith.constant 0 : index
    %c0_5 = arith.constant 0 : index
    %6 = vector.load %arg12[%c0_4, %c0_5] : memref<1x512xf32, #tpu.memory_space<vmem>>, vector<1x512xf32>
    %7 = vector.broadcast %6 : vector<1x512xf32> to vector<8x512xf32>
    %8 = arith.addf %5, %7 : vector<8x512xf32>
    %c0_6 = arith.constant 0 : index
    %c0_7 = arith.constant 0 : index
    %9 = vector.load %arg13[%c0_6, %c0_7] : memref<8x512xf32, #tpu.memory_space<vmem>>, vector<8x512xf32>
    tpu.vector_store %arg13[%c0_6, %c0_7], %8 {strides = array<i32>} : memref<8x512xf32, #tpu.memory_space<vmem>>, vector<8x512xf32>,
    return
  }
  func.func @transform_0(%arg0: i32, %arg1: i32) -> (i32, i32) {
    %c0_i32 = arith.constant 0 : i32
    %c0_i32_0 = arith.constant 0 : i32
    return %arg0, %c0_i32 : i32, i32
  }
  func.func @transform_1(%arg0: i32, %arg1: i32) -> (i32, i32) {
    %c0_i32 = arith.constant 0 : i32
    %c0_i32_0 = arith.constant 0 : i32
    %c0_i32_1 = arith.constant 0 : i32
    return %c0_i32, %c0_i32_0 : i32, i32
  }
  func.func @transform_2(%arg0: i32, %arg1: i32) -> (i32, i32) {
    %c0_i32 = arith.constant 0 : i32
    %c0_i32_0 = arith.constant 0 : i32
    %c0_i32_1 = arith.constant 0 : i32
    return %c0_i32, %c0_i32_0 : i32, i32
  }
  func.func @transform_3(%arg0: i32, %arg1: i32) -> (i32, i32) {
    %c0_i32 = arith.constant 0 : i32
    %c0_i32_0 = arith.constant 0 : i32
    %c0_i32_1 = arith.constant 0 : i32
    return %c0_i32, %c0_i32_0 : i32, i32
  }
  func.func @transform_4(%arg0: i32, %arg1: i32) -> (i32, i32) {
    %c0_i32 = arith.constant 0 : i32
    %c0_i32_0 = arith.constant 0 : i32
    %c0_i32_1 = arith.constant 0 : i32
    return %c0_i32, %c0_i32_0 : i32, i32
  }
  func.func @transform_5(%arg0: i32, %arg1: i32) -> (i32, i32) {
    %c0_i32 = arith.constant 0 : i32
    %c0_i32_0 = arith.constant 0 : i32
    %c0_i32_1 = arith.constant 0 : i32
    return %c0_i32, %c0_i32_0 : i32, i32
  }
  func.func @transform_6(%arg0: i32, %arg1: i32) -> (i32, i32) {
    %c0_i32 = arith.constant 0 : i32
    %c0_i32_0 = arith.constant 0 : i32
    %c0_i32_1 = arith.constant 0 : i32
    return %c0_i32, %c0_i32_0 : i32, i32
  }
  func.func @transform_7(%arg0: i32, %arg1: i32) -> (i32, i32) {
    %c0_i32 = arith.constant 0 : i32
    %c0_i32_0 = arith.constant 0 : i32
    %c0_i32_1 = arith.constant 0 : i32
    return %c0_i32, %c0_i32_0 : i32, i32
  }
  func.func @transform_8(%arg0: i32, %arg1: i32) -> (i32, i32) {
    %c0_i32 = arith.constant 0 : i32
    %c0_i32_0 = arith.constant 0 : i32
    %c0_i32_1 = arith.constant 0 : i32
    return %c0_i32, %c0_i32_0 : i32, i32
  }
  func.func @transform_9(%arg0: i32, %arg1: i32) -> (i32, i32) {
    %c0_i32 = arith.constant 0 : i32
    %c0_i32_0 = arith.constant 0 : i32
    return %c0_i32, %arg1 : i32, i32
  }
  func.func @transform_10(%arg0: i32, %arg1: i32) -> (i32, i32) {
    %c0_i32 = arith.constant 0 : i32
    %c0_i32_0 = arith.constant 0 : i32
    return %c0_i32, %arg1 : i32, i32
  }
  func.func @transform_11(%arg0: i32, %arg1: i32) -> (i32, i32) {
    %c0_i32 = arith.constant 0 : i32
    return %arg0, %arg1 : i32, i32
  }
}

</mosaic_0001>

<bundles_post_ra>
// kernel: _lm_head_forward.1
= control target key start
LH: loop header
LB: loop body
LE: loop exit
PB: predicated region body
PF: predicated region fallthrough
CT: control target
= control target key end

     0   :  { %s2026_s0 = inlined_call_operand.hbm [shape: f32[16,32], index: 0, kind: input, shape index: {}]   ;;  %s2027_s1 = inlined_call_operand.vmem [shape: f32[32,32], index: 1, kind: input, shape index: {}]   ;;  %s2028_s2 = inlined_call_operand.hbm [shape: f32[1,32], index: 2, kind: input, shape index: {}]   ;;  %s2029_s3 = inlined_call_operand.hbm [shape: f32[1,32], index: 3, kind: input, shape index: {}]   ;;  %s2030_s4 = inlined_call_operand.hbm [shape: f32[1,32], index: 4, kind: input, shape index: {}]   ;;  %s2031_s5 = inlined_call_operand.hbm [shape: f32[32,64], index: 5, kind: input, shape index: {}]   ;;  %s2032_s6 = inlined_call_operand.hbm [shape: f32[1,64], index: 6, kind: input, shape index: {}]   ;;  %s2033_s7 = inlined_call_operand.vmem [shape: f32[64,16], index: 7, kind: input, shape index: {}]   ;;  %s2034_s8 = inlined_call_operand.hbm [shape: f32[1,16], index: 8, kind: input, shape index: {}]   ;;  %s2035_s9 = inlined_call_operand.vmem [shape: f32[16,512], index: 9, kind: input, shape index: {}]   ;;  %s2036_s10 = inlined_call_operand.vmem [shape: f32[1,512], index: 10, kind: input, shape index: {}]   ;;  %s2037_s11 = inlined_call_operand.vmem [shape: f32[16,512], index: 11, kind: output, shape index: {}]  }
   0x1   :  { %2041 = sst [smem:[#allocation18_spill]] %s2028_s2 }
   0x2   :  { %2042 = sst [smem:[#allocation19_spill]] %s2029_s3 }
   0x3   :  { %2043 = sst [smem:[#allocation20_spill]] %s2030_s4 }
   0x4   :  { %2044 = sst [smem:[#allocation21_spill]] %s2031_s5 }
   0x5   :  { %2045 = sst [smem:[#allocation22_spill]] %s2032_s6 }
   0x6   :  { %16 = vsyncpa [#allocation4], 0 }
   0x7   :  { %18 = vsyncpa [#allocation4 + $0x1], 0 }
   0x8   :  { %19 = vsyncpa [#allocation6], 0 }
   0x9   :  { %20 = vsyncpa [#allocation9], 0 }
   0xa   :  { %21 = vsyncpa [#allocation12], 0  ;;  %s1748_s17 = smov 0   ;;  %s1750_s18 = smov 0  }
   0xb   :  { %s1752_s19 = smov 0   ;;  %s1754_s20 = smov 0  }
   0xc   :  { %s1756_s21 = smov 0   ;;  %s1758_s22 = smov 0  }
   0xd LB: > { %s1206_s23 = sadd.s32 4294967295, %s1675_s22   ;;  %p1208_p0 = scmp.ge.s32.totalorder %s1675_s22, 1  ;;  %s1675_s22 = sphi %s1758_s22, %s27_s22   ;;  %s1671_s21 = sphi %s1756_s21, %s2065_s21   ;;  %s1667_s20 = sphi %s1754_s20, %s2064_s20   ;;  %s1663_s19 = sphi %s1752_s19, %s2063_s19   ;;  %s1659_s18 = sphi %s1750_s18, %s2062_s18   ;;  %s1655_s17 = sphi %s1748_s17, %s2061_s17  }
   0xe   : > { %p1780_p1 = scmp.eq.s32.totalorder %s1206_s23, 0  ;;  %p318_p2 = scmp.lt.s32.totalorder %s1675_s22, 3 }
   0xf   : > { %s1677_s26 = smov [#allocation5]   ;;  %s1678_s28 = smov [#allocation8]  }
  0x10   : > { %s2046_s24 = scalar_select %p1780_p1, 1, 0 }
  0x11   : > { %p1785_p3 = pnand %p1208_p0, %p318_p2  ;;  %s334_s27 = sshll.u32 %s1677_s26, 4  ;;  %s335_s27 = int_to_ptr.vmem [resolvable:$true] %s334_s27 }
  0x12   : > { %s356_s29 = sshll.u32 %s1678_s28, 4  ;;  %s1679_s12 = smov [#allocation11]   ;;  %s357_s29 = int_to_ptr.vmem [resolvable:$true] %s356_s29 }
  0x13   : > { %s2047_s25 = scalar_select %p1785_p3, 1, 0 }
  0x14   : > { %p1329_p4 = pneg %p1785_p3  ;;  %s380_s13 = sshll.u32 %s1679_s12, 4  ;;  %s1797_s13 = int_to_ptr.vmem [resolvable:$true] %s380_s13 }
  0x15   : > { %s1440_s15 = scalar_lea.vmem %s335_s27, 16  ;;  %s1447_s16 = scalar_lea.vmem %s335_s27, 32 }
  0x16   : > { %p1793_p5 = pnand %p1329_p4, %p1780_p1  ;;  %p1441_p7 = scmp.ne.s32.totalorder %s335_s27, %s1440_s15 }
  0x17   : > { %p1448_p10 = scmp.lt.s32.totalorder %s335_s27, %s335_s27  ;;  %p1449_p11 = scmp.lt.s32.totalorder %s1447_s16, %s1440_s15 }
  0x18   : > { %p1801_p6 = pneg %p1793_p5 }
  0x19   : > { %p1450_p12 = por %p1449_p11, %p1448_p10 }
  0x1a   : > { %p1443_p8 = pnand %p1441_p7, %p1801_p6 }
  0x1c   : > { %p1444_p9 = pneg %p1443_p8 }
  0x1e   : > { %p1451_p13 = pnand %p1450_p12, %p1444_p9 }
  0x20   : > { %1454 = shalt.err (!%p1451_p13)
}
  0x21   : > { %s2050_s2 = sld [smem:[#allocation18_spill]]  ;;  %s1466_s28 = scalar_lea.vmem %s357_s29, 16 }
  0x22   : > { %p1467_p0 = scmp.ne.s32.totalorder %s357_s29, %s1466_s28  ;;  %s1473_s12 = scalar_lea.vmem %s357_s29, 32 }
  0x23   : > { %p1474_p7 = scmp.lt.s32.totalorder %s357_s29, %s357_s29  ;;  %p1475_p8 = scmp.lt.s32.totalorder %s1473_s12, %s1466_s28 }
  0x24   : > { %p1469_p2 = pnand %p1467_p0, %p1801_p6 }
  0x25   : > { %p1476_p3 = por %p1475_p8, %p1474_p7 }
  0x26   : > { %p1470_p4 = pneg %p1469_p2 }
  0x27   : > { %1332 = dma.hbm_to_vmem [thread:$0]  (!%p1793_p5), %s2050_s2, 16, %s335_s27, [#allocation6]  }
  0x28   : > { %p1477_p1 = pnand %p1476_p3, %p1470_p4 }
  0x2a   : > { %1480 = shalt.err (!%p1477_p1)
}
  0x2b   : > { %s2051_s4 = sld [smem:[#allocation20_spill]]  ;;  %s1492_s27 = scalar_lea.vmem %s1797_s13, 16 }
  0x2c   : > { %p1493_p9 = scmp.ne.s32.totalorder %s1797_s13, %s1492_s27  ;;  %s1499_s23 = scalar_lea.vmem %s1797_s13, 32 }
  0x2d   : > { %p1500_p3 = scmp.lt.s32.totalorder %s1797_s13, %s1797_s13  ;;  %p1501_p1 = scmp.lt.s32.totalorder %s1499_s23, %s1492_s27 }
  0x2e   : > { %p1495_p10 = pnand %p1493_p9, %p1801_p6 }
  0x2f   : > { %p1502_p12 = por %p1501_p1, %p1500_p3 }
  0x30   : > { %p1496_p11 = pneg %p1495_p10 }
  0x31   : > { %1338 = dma.hbm_to_vmem [thread:$0]  (!%p1793_p5), %s2051_s4, 16, %s357_s29, [#allocation9]  }
  0x32   : > { %p1503_p13 = pnand %p1502_p12, %p1496_p11 }
  0x34   : > { %1506 = shalt.err (!%p1503_p13)
}
  0x35   : > { %s2052_s6 = sld [smem:[#allocation22_spill]]  ;;  %s1680_s29 = smov [#allocation7]  }
  0x36   : > { %s345_s12 = sshll.u32 %s1680_s29, 4  ;;  %s1681_s15 = smov [#allocation10]   ;;  %s346_s12 = int_to_ptr.vmem [resolvable:$true] %s345_s12 }
  0x37   : > { %s366_s16 = sshll.u32 %s1681_s15, 4  ;;  %s1518_s2 = scalar_lea.vmem %s346_s12, 16  ;;  %s367_s16 = int_to_ptr.vmem [resolvable:$true] %s366_s16 }
  0x38   : > { %p1519_p0 = scmp.ne.s32.totalorder %s346_s12, %s1518_s2  ;;  %s1525_s27 = scalar_lea.vmem %s346_s12, 32 }
  0x39   : > { %p1526_p7 = scmp.lt.s32.totalorder %s346_s12, %s346_s12  ;;  %p1527_p8 = scmp.lt.s32.totalorder %s1525_s27, %s1518_s2 }
  0x3a   : > { %p1521_p2 = pnand %p1519_p0, %p1801_p6 }
  0x3b   : > { %1344 = dma.hbm_to_vmem [thread:$0]  (!%p1793_p5), %s2052_s6, 16, %s1797_s13, [#allocation12]  }
  0x3c   : > { %p1522_p4 = pneg %p1521_p2  ;;  %p1528_p9 = por %p1527_p8, %p1526_p7 }
  0x3e   : > { %p1529_p10 = pnand %p1528_p9, %p1522_p4 }
  0x40   : > { %1532 = shalt.err (!%p1529_p10)
}
  0x41   : > { %s2053_s3 = sld [smem:[#allocation19_spill]]  ;;  %s1544_s26 = scalar_lea.vmem %s367_s16, 512 }
  0x42   : > { %p1545_p11 = scmp.ne.s32.totalorder %s367_s16, %s1544_s26  ;;  %p1552_p12 = scmp.lt.s32.totalorder %s367_s16, %s367_s16 }
  0x43   : > { %p1553_p13 = scmp.lt.s32.totalorder %s1544_s26, %s1544_s26 }
  0x44   : > { %p1547_p3 = pnand %p1545_p11, %p1801_p6 }
  0x45   : > { %p1554_p0 = por %p1553_p13, %p1552_p12 }
  0x46   : > { %p1548_p1 = pneg %p1547_p3 }
  0x47   : > { %1335 = dma.hbm_to_vmem [thread:$0]  (!%p1793_p5), %s2053_s3, 16, %s346_s12, [#allocation6]  }
  0x48   : > { %p1555_p2 = pnand %p1554_p0, %p1548_p1 }
  0x4a   : > { %1558 = shalt.err (!%p1555_p2)
}
  0x4b   : > { %s1682_s2 = smov 128   ;;  %s1683_s28 = smov 8  }
  0x4c   : > { %s2054_s5 = sld [smem:[#allocation21_spill]]  ;;  %s1684_s12 = smov [#allocation13]  }
  0x4d   : > { %s394_s27 = sshll.u32 %s1684_s12, 4  ;;  %s395_s27 = int_to_ptr.vmem [resolvable:$true] %s394_s27 }
  0x4e   : > { %s1570_s23 = scalar_lea.vmem %s395_s27, 16  ;;  %s1577_s13 = scalar_lea.vmem %s395_s27, 32 }
  0x4f   : > { %p1571_p4 = scmp.ne.s32.totalorder %s395_s27, %s1570_s23  ;;  %p1578_p9 = scmp.lt.s32.totalorder %s395_s27, %s395_s27 }
  0x50   : > { %p1579_p10 = scmp.lt.s32.totalorder %s1577_s13, %s1570_s23 }
  0x51   : > { %p1573_p7 = pnand %p1571_p4, %p1801_p6 }
  0x52   : > { %1341 = dma.hbm_to_vmem [thread:$0]  (!%p1793_p5), %s2054_s5, 512, %s367_s16, [#allocation9], %s1682_s2, %s1682_s2, %s1683_s28  }
  0x53   : > { %p1574_p8 = pneg %p1573_p7  ;;  %p1580_p11 = por %p1579_p10, %p1578_p9 }
  0x55   : > { %p1581_p3 = pnand %p1580_p11, %p1574_p8 }
  0x57   : > { %1584 = shalt.err (!%p1581_p3)
}
  0x58   : > { %1347 = dma.hbm_to_vmem [thread:$0]  (!%p1793_p5), %s2034_s8, 16, %s395_s27, [#allocation12]  }
  0x59   : > { %s39_s14 = sadd.s32 1, %s1671_s21  ;;  %s46_s16 = sadd.s32 1, %s1663_s19 }
  0x5a   : > { %p41_p6 = scmp.ge.s32.totalorder %s39_s14, 2  ;;  %p53_p1 = scmp.ne.s32.totalorder %s1663_s19, %s1659_s18 }
  0x5b   : > { %p54_p12 = scmp.eq.s32.totalorder %s1675_s22, 0  ;;  %p59_p13 = scmp.ne.s32.totalorder %s1659_s18, %s1655_s17 }
  0x5c   : > { %s2067_s14 = smov (%p41_p6, %s39_s14), 0  ;;  %p2056_p2 = scmp.ne.s32.totalorder %s2046_s24, 0 }
  0x5d   : > { %p1862_p0 = por %p54_p12, %p53_p1  ;;  %s43_s2 = ssub.s32 %s1671_s21, %s2067_s14 }
  0x5e   : > { %p1868_p4 = por %p2056_p2, %p59_p13  ;;  %p1358_p5 = scmp.lt.s32.totalorder %s1675_s22, 2 }
  0x5f   : > { %p44_p7 = scmp.eq.s32.totalorder %s43_s2, 0  ;;  %s422_s28 = sand.u32 1, %s1663_s19  }
  0x60   : > { %s1218_s29 = sshll.u32 %s422_s28, 3  ;;  %s1219_s17 = sshll.u32 %s1671_s21, 7 }
  0x61   : > { %s1877_s15 = scalar_select %p44_p7, %s1663_s19, %s46_s16  }
  0x62   : > { %s431_s23 = scalar_lea.hbm %s2026_s0, %s1219_s17  ;;  %s426_s13 = scalar_lea.vmem [#allocation3], %s1218_s29 }
  0x63   : > { %s433_s26 = sshll.u32 %s426_s13, 4  ;;  %p1885_p8 = pnand %p1358_p5, %p1862_p0  ;;  %s434_s26 = int_to_ptr.vmem [resolvable:$true] %s433_s26 }
  0x64   : > { %s423_s5 = scalar_lea.sflag [#allocation4], %s422_s28  ;;  %s1598_s2 = scalar_lea.vmem %s434_s26, 128 }
  0x65   : > { %p1587_p9 = pneg %p1885_p8  ;;  %p1599_p10 = scmp.ne.s32.totalorder %s434_s26, %s1598_s2 }
  0x66   : > { %s1685_s16 = smov [#allocation3]  }
  0x67   : > { %p1601_p11 = pnand %p1599_p10, %p1587_p9  ;;  %s1603_s6 = sshll.u32 %s1685_s16, 4  ;;  %s1604_s6 = int_to_ptr.vmem [resolvable:$false] %s1603_s6 }
  0x68   : > { %s1605_s17 = scalar_lea.vmem %s1604_s6, 256  ;;  %p1606_p6 = scmp.lt.s32.totalorder %s434_s26, %s1604_s6 }
  0x69   : > { %p1602_p3 = pneg %p1601_p11  ;;  %p1607_p1 = scmp.lt.s32.totalorder %s1605_s17, %s1598_s2 }
  0x6b   : > { %p1608_p12 = por %p1607_p1, %p1606_p6 }
  0x6d   : > { %p1609_p13 = pnand %p1608_p12, %p1602_p3 }
  0x6f   : > { %1612 = shalt.err (!%p1609_p13)
}
  0x70   : > { %1351 = dma.hbm_to_vmem [thread:$0]  (!%p1885_p8), %s431_s23, 128, %s434_s26, %s423_s5  }
  0x71   : > { %p2059_p0 = scmp.ne.s32.totalorder %s2047_s25, 0 }
  0x72   : > { %s444_s3 = sand.u32 (!%p2059_p0), 1, %s1659_s18  }
  0x73   : > { %442 = sbr.rel (%p2059_p0) target bundleno = 1138 (0x472), region = 64  ;;  %s1221_s28 = sshll.u32 (!%p2059_p0), %s444_s3, 3 }
  0x74   : > { %s445_s29 = scalar_lea.sflag (!%p2059_p0), [#allocation4], %s444_s3  ;;  %s448_s12 = scalar_lea.vmem (!%p2059_p0), [#allocation3], %s1221_s28 }
  0x78   : > { %1638 = dma.done.wait (%p1868_p4), %s445_s29, 128  }
  0x79   : > { %1640 = vsyncadd (%p1868_p4), %s445_s29, 4294967168  ;;  %p2060_p2 = scmp.ne.s32.totalorder %s2046_s24, 0 }
  0x7b   : > { %1642 = dma.done.wait (%p2060_p2), [#allocation6], 32  }
  0x7c   : > { %1644 = vsyncadd (%p2060_p2), [#allocation6], 4294967264 }
  0x7d   : > { %1646 = dma.done.wait (%p2060_p2), [#allocation9], 528  }
  0x7e   : > { %1648 = vsyncadd (%p2060_p2), [#allocation9], 4294966768 }
  0x7f   : > { %1650 = dma.done.wait (%p2060_p2), [#allocation12], 32  }
  0x80   : > { %1652 = vsyncadd (%p2060_p2), [#allocation12], 4294967264  ;;  %v1686_v0 = vmov 0.0   ;;  %vm1687_vm0 = vmmov 0   ;;  %v553_v1 = vld [vmem:[%s2027_s1 + $0x18] sm:$0xff]  ;;  %v552_v2 = vld [vmem:[%s2027_s1 + $0x10] sm:$0xff]  ;;  %v860_v63 = vlaneseq }
  0x81   : > { %1262 = vmatprep.subr.mxu0 %v1686_v0  ;;  %1270 = vmatprep.mubr.msk.f32.mxu0 %vm1687_vm0, %v1686_v0  ;;  %v551_v3 = vld [vmem:[%s2027_s1 + $0x8] sm:$0xff]  ;;  %v550_v4 = vld [vmem:[%s2027_s1] sm:$0xff]  ;;  %vm561_vm1 = vcmask 261120   ;;  %v1230_v6 = vld [vmem:[#allocation5] ss:$0 sm:$0xff]  ;;  %vm773_vm2 = vcmask 523264  }
  0x82   : > { %1273 = vmatprep.subr.mxu1 %v1686_v0  ;;  %1281 = vmatprep.mubr.msk.f32.mxu1 %vm1687_vm0, %v1686_v0  ;;  %v549_v5 = vld [vmem:[%s448_s12] sm:$0xff]  ;;  %v673_v21 = vld [vmem:[#allocation10] sm:$0xff]  ;;  %v1232_v32 = vld [vmem:[#allocation7] ss:$0 sm:$0xff]  ;;  %vm847_vm3 = vcmask 130048   ;;  %p536_p4 = scmp.lt.s32.totalorder %s1667_s20, 1 }
  0x83   : > { %1263 = vmatpush3.msra.mxu0 %v553_v1  ;;  %v676_v18 = vld [vmem:[#allocation10 + $0x18] sm:$0xff]  ;;  %v675_v19 = vld [vmem:[#allocation10 + $0x10] sm:$0xff]  ;;  %v674_v20 = vld [vmem:[#allocation10 + $0x8] sm:$0xff]  ;;  %v861_v1 = vshrl.u32 %v860_v63, 7 }
  0x84   : > { %1264 = vmatprep.subr.mxu0 %v1686_v0  ;;  %1274 = vmatpush3.msra.mxu1 %v676_v18  ;;  %v1233_v34 = vld [vmem:[#allocation8] ss:$0 sm:$0xff]  ;;  %v764_v38 = vld [vmem:[%s2033_s7 + $0x30] sm:$0xff]  ;;  %v763_v39 = vld [vmem:[%s2033_s7 + $0x28] sm:$0xff]  ;;  %s2069_s20 = smov (!%p536_p4, %s1667_s20), 1 }
  0x85   : > { %1265 = vmatpush3.msra.mxu0 %v552_v2  ;;  %1275 = vmatprep.subr.mxu1 %v1686_v0  ;;  %v765_v37 = vld [vmem:[%s2033_s7 + $0x38] sm:$0xff]  ;;  %v762_v40 = vld [vmem:[%s2033_s7 + $0x20] sm:$0xff]  ;;  %v760_v42 = vld [vmem:[%s2033_s7 + $0x10] sm:$0xff]  ;;  %v862_v2 = vsub.s32 0, %v861_v1  ;;  %s1242_s13 = sshll.u32 %s2069_s20, 5 }
  0x86   : > { %1266 = vmatprep.subr.mxu0 %v1686_v0  ;;  %1276 = vmatpush3.msra.mxu1 %v675_v19  ;;  %v761_v41 = vld [vmem:[%s2033_s7 + $0x18] sm:$0xff]  ;;  %v759_v43 = vld [vmem:[%s2033_s7 + $0x8] sm:$0xff]  ;;  %v758_v44 = vld [vmem:[%s2033_s7] sm:$0xff]  ;;  %s543_s16 = scalar_lea.vmem %s2037_s11, %s1242_s13 }
  0x87   : > { %1267 = vmatpush3.msra.mxu0 %v551_v3  ;;  %1277 = vmatprep.subr.mxu1 %v1686_v0  ;;  %v1234_v45 = vld [vmem:[#allocation11] ss:$0 sm:$0xff]  ;;  %v855_v50 = vld [vmem:[%s2035_s9 + $0x28] sm:$0xff]  ;;  %v854_v51 = vld [vmem:[%s2035_s9 + $0x20] sm:$0xff] }
  0x88   : > { %1268 = vmatprep.subr.mxu0 %v1686_v0  ;;  %1278 = vmatpush3.msra.mxu1 %v674_v20  ;;  %v851_v52 = vld [vmem:[%s2035_s9 + $0x8] sm:$0xff]  ;;  %v850_v53 = vld [vmem:[%s2035_s9] sm:$0xff]  ;;  %v857_v54 = vld [vmem:[%s2035_s9 + $0x38] sm:$0xff] }
  0x89   : > { %1269 = vmatpush3.msra.mxu0 %v550_v4  ;;  %1279 = vmatprep.subr.mxu1 %v1686_v0  ;;  %v1236_v55 = vld [vmem:[#allocation13] ss:$0 sm:$0xff]  ;;  %v856_v59 = vld [vmem:[%s2035_s9 + $0x30] sm:$0xff]  ;;  %v853_v61 = vld [vmem:[%s2035_s9 + $0x18] sm:$0xff]  ;;  %v866_v4 = vsub.s32 1, %v861_v1 }
  0x8a   : > { %1271 = vmatmul.mubr.msk.f32.vlgmr.msra.gmra.mxu0 %vm561_vm1, %v549_v5  ;;  %1284 = vmatprep.subr.mxu0 %v1686_v0  ;;  %v852_v62 = vld [vmem:[%s2035_s9 + $0x10] sm:$0xff]  ;;  %v858_v3 = vld [vmem:[%s2036_s10] sm:$0xf] }
  0x8b   : > { %1300 = vmatprep.mubr.msk.f32.mxu0 %vm1687_vm0, %v1686_v0  ;;  %1280 = vmatpush3.msra.mxu1 %v673_v21  ;;  %v863_v5 = vrot.slane %v858_v3, %v862_v2 }
  0x8c   : > { %1285 = vmatpush3.msra.mxu0 %v765_v37  ;;  %912 = vmatprep.subr.mxu1 %v855_v50 }
  0x8d   : > { %1286 = vmatprep.subr.mxu0 %v1686_v0 }
  0x8e   : > { %1287 = vmatpush3.msra.mxu0 %v764_v38 }
  0x8f   : > { %1288 = vmatprep.subr.mxu0 %v1686_v0 }
  0x90   : > { %1289 = vmatpush3.msra.mxu0 %v763_v39 }
  0x91   : > { %1290 = vmatprep.subr.mxu0 %v1686_v0 }
  0x92   : > { %1291 = vmatpush3.msra.mxu0 %v762_v40 }
  0x93   : > { %1292 = vmatprep.subr.mxu0 %v1686_v0 }
  0x94   : > { %1293 = vmatpush3.msra.mxu0 %v761_v41 }
  0x95   : > { %1294 = vmatprep.subr.mxu0 %v1686_v0 }
  0x96   : > { %1295 = vmatpush3.msra.mxu0 %v760_v42 }
  0x97   : > { %1296 = vmatprep.subr.mxu0 %v1686_v0 }
  0x98   : > { %1297 = vmatpush3.msra.mxu0 %v759_v43 }
  0x99   : > { %1298 = vmatprep.subr.mxu0 %v1686_v0 }
  0x9a   : > { %1299 = vmatpush3.msra.mxu0 %v758_v44 }
 0x14a   : > { %v631_v7 = vpop.f32.mrf.mxu0 }
 0x14b   : > { %v632_v8 = vadd.f32 %v1230_v6, %v631_v7  ;;  %v870_v6 = vsub.s32 2, %v861_v1  ;;  %v867_v7 = vrot.slane %v858_v3, %v866_v4 }
 0x14c   : > { %v1272_v9 = vpop.f32.mrf.mxu0 }
 0x14d   : > { %v636_v10 = vmul.f32 0.70710677, %v632_v8  ;;  %v635_v12 = vmul.f32 0.5, %v632_v8  ;;  %v874_v8 = vsub.s32 3, %v861_v1 }
 0x14f   : > { %1423 = verf.f32 %v636_v10  ;;  %v871_v10 = vrot.slane %v858_v3, %v870_v6 }
 0x15c   : > { %v1424_v11 = vpop.eup %1423 }
 0x15d   : > { %v638_v13 = vadd.f32 1.0, %v1424_v11 }
 0x15f   : > { %v639_v14 = vmul.f32 %v638_v13, %v635_v12  ;;  %v875_v13 = vrot.slane %v858_v3, %v874_v8 }
 0x161   : > { %v640_v15 = vsel %vm561_vm1, %v639_v14, 0.0  ;;  %v645_v16 = vmul.f32 %v639_v14, %v639_v14 }
 0x162   : > { %641 = vadd.xlane.f32.xlu0 %v640_v15 }
 0x163   : > { %v646_v17 = vsel %vm561_vm1, %v645_v16, 0.0 }
 0x166   : > { %647 = vadd.xlane.f32.xlu0 %v646_v17 }
 0x1eb   : > { %v642_v22 = vpop.xlane.xlu0 %641 }
 0x1ec   : > { %v644_v23 = vmul.f32 0.03125, %v642_v22 }
 0x1ee   : > { %v650_v25 = vmul.f32 %v644_v23, %v644_v23  ;;  %v653_v30 = vsub.f32 %v639_v14, %v644_v23 }
 0x1ef   : > { %v648_v24 = vpop.xlane.xlu0 %647 }
 0x1f0   : > { %v649_v26 = vmul.f32 0.03125, %v648_v24 }
 0x1f2   : > { %v651_v27 = vsub.f32 %v649_v26, %v650_v25 }
 0x1f4   : > { %v652_v28 = vmax.f32 %v651_v27, 0.0 }
 0x1f6   : > { %v654_v29 = vadd.f32 1e-12, %v652_v28 }
 0x1f8   : > { %1425 = vrsqrt.f32 %v654_v29 }
 0x205   : > { %v1426_v31 = vpop.eup %1425 }
 0x206   : > { %v656_v33 = vmul.f32 %v1426_v31, %v653_v30 }
 0x208   : > { %v664_v35 = vmul.f32 %v1232_v32, %v656_v33 }
 0x20a   : > { %v672_v36 = vadd.f32 %v1233_v34, %v664_v35 }
 0x20c   : > { %1282 = vmatmul.mubr.msk.f32.vlgmr.msra.gmra.mxu1 %vm561_vm1, %v672_v36 }
 0x20d   : > { %948 = vmatprep.mubr.f32.mxu1 %v1686_v0  ;;  %913 = vmatpush1.msra.mxu1 %v854_v51 }
 0x20e   : > { %914 = vmatprep.subr.mxu1 %v851_v52 }
 0x20f   : > { %915 = vmatpush1.msra.mxu1 %v850_v53 }
 0x210   : > { %983 = vmatprep.subr.mxu1 %v857_v54 }
 0x2cc   : > { %v753_v46 = vpop.f32.mrf.mxu1 }
 0x2cd   : > { %v754_v47 = vadd.f32 %v1234_v45, %v753_v46 }
 0x2ce   : > { %v1283_v48 = vpop.f32.mrf.mxu1 }
 0x2cf   : > { %1427 = vtanh.f32 %v754_v47 }
 0x2dc   : > { %v1428_v49 = vpop.eup %1427 }
 0x2dd   : > { %1301 = vmatmul.mubr.msk.f32.vlgmr.msra.gmra.mxu0 %vm773_vm2, %v1428_v49 }
 0x39d   : > { %v843_v56 = vpop.f32.mrf.mxu0 }
 0x39e   : > { %v844_v57 = vadd.f32 %v1236_v55, %v843_v56 }
 0x39f   : > { %v1302_v58 = vpop.f32.mrf.mxu0 }
 0x3a0   : > { %848 = vst.msk [vmem:[#allocation2] sm:$0xff] %vm847_vm3, %v844_v57 }
 0x3a7   : > { %v849_v60 = vld [vmem:[#allocation2] sm:$0xff] }
 0x3a8   : > { %1238 = vmatmul.mubr.msk.f32.vlgmr.msra.gmra.mxu1 %vm847_vm3, %v849_v60 }
 0x3a9   : > { %984 = vmatpush1.msra.mxu1 %v856_v59  ;;  %1019 = vmatprep.mubr.f32.mxu1 %v1686_v0 }
 0x3aa   : > { %985 = vmatprep.subr.mxu1 %v853_v61 }
 0x3ab   : > { %986 = vmatpush1.msra.mxu1 %v852_v62 }
 0x3ac   : > { %1239 = vmatmul.mubr.msk.f32.vlgmr.msra.gmra.mxu1 %vm847_vm3, %v849_v60 }
 0x468   : > { %v950_v0 = vpop.f32.mrf.mxu1 }
 0x469   : > { %v951_v9 = vadd.f32 %v950_v0, %v863_v5 }
 0x46a   : > { %v952_v11 = vpop.f32.mrf.mxu1 }
 0x46b   : > { %1026 = vst [vmem:[%s543_s16] sm:$0xff] %v951_v9  ;;  %v953_v12 = vadd.f32 %v952_v11, %v867_v7 }
 0x46c   : > { %v1021_v14 = vpop.f32.mrf.mxu1 }
 0x46d   : > { %1027 = vst [vmem:[%s543_s16 + $0x8] sm:$0xff] %v953_v12  ;;  %v1022_v15 = vadd.f32 %v1021_v14, %v871_v10 }
 0x46e   : > { %v1023_v16 = vpop.f32.mrf.mxu1 }
 0x46f   : > { %1028 = vst [vmem:[%s543_s16 + $0x10] sm:$0xff] %v1022_v15  ;;  %v1024_v17 = vadd.f32 %v1023_v16, %v875_v13 }
 0x471   : > { %1029 = vst [vmem:[%s543_s16 + $0x18] sm:$0xff] %v1024_v17 }
 0x472 PF: > { %s27_s22 = sadd.s32 1, %s1675_s22   ;;  %s2061_s17 = smov %s1659_s18 }
 0x473   : > { %p24_p5 = scmp.ge.s32.totalorder %s27_s22, 4   ;;  %s2062_s18 = smov %s1663_s19 }
 0x474   : > { %s2063_s19 = smov %s1877_s15  ;;  %s2064_s20 = smov %s1671_s21 }
 0x475   : > { %s2065_s21 = smov %s2067_s14  ;;  %26 = sbr.rel (!%p24_p5) target bundleno = 13 (0xd), region = 138 }
 0x47a   :  { %1060 = vsyncpa [#allocation4], 1 }
 0x47b   :  { %1062 = vsyncpa [#allocation4 + $0x1], 1 }
 0x47c   :  { %1063 = vsyncpa [#allocation6], 1 }
 0x47d   :  { %1064 = vsyncpa [#allocation9], 1 }
 0x47e   :  { %1065 = vsyncpa [#allocation12], 1 }

</bundles_post_ra>
